<compile_context>
chip_gen: v7x
topology: tpu7x:2x2x1
jax: 0.10.0
libtpu: 0.0.40
codegen_flags: <defaults>
</compile_context>

<pallas_src>
import functools

import jax
import jax.numpy as jnp
from jax.experimental import pallas as pl
from jax.experimental.pallas import tpu as pltpu

_LANE = 128
_SUBLANE = 8
_MAX_BLOCK_B = 4096     # cap: keeps double-buffered x/out tiles inside v7x scoped VMEM
_VPU_L1_MAX_K = 16      # obs_dim <= this -> layer 1 as VPU broadcast-MACs (skip MXU K-pad waste)


def _round_up(n: int, m: int) -> int:
    return ((n + m - 1) // m) * m


def _cdiv(a: int, b: int) -> int:
    return (a + b - 1) // b


def _qnetwork_kernel(x_ref, w1_ref, b1_ref, w2_ref, b2_ref, o_ref):
    obs_dim = x_ref.shape[1]
    if obs_dim <= _VPU_L1_MAX_K:
        # Layer 1 on the VPU as obs_dim broadcast multiply-adds (all f32).
        # With K this small the MXU would pad the contraction to 128 and waste
        # ~97% of the pass; on v5e this roughly halves MXU time per tile, on
        # v6e/v7x the VPU slots are idle here so it is free.
        x = x_ref[...].astype(jnp.float32)        # [TB, K]
        w1 = w1_ref[...].astype(jnp.float32)      # [K, H]
        h = x[:, 0:1] * w1[0:1, :]
        for k in range(1, obs_dim):
            h = h + x[:, k:k + 1] * w1[k:k + 1, :]
        h = h + b1_ref[...]
    else:
        # Layer 1 on the MXU; weights were pre-cast once in prepare(), only the
        # streamed activations are cast per step.
        h = jnp.dot(x_ref[...].astype(w1_ref.dtype), w1_ref[...],
                    preferred_element_type=jnp.float32) + b1_ref[...]
    # ReLU in f32 on the VPU (v5e has no bf16 VPU path).
    h = jnp.maximum(h, 0.0)
    # Layer 2 on the MXU (f32 accumulation), narrow output columns.
    out = jnp.dot(h.astype(w2_ref.dtype), w2_ref[...],
                  preferred_element_type=jnp.float32)
    o_ref[...] = (out + b2_ref[...]).astype(o_ref.dtype)


def prepare_qnetwork_params(w1, b1, w2, b2, mxu_dtype=jnp.bfloat16):
    """One-time parameter prep (call at init, not per forward):
    biases -> [1, .] f32; MXU weights cast to mxu_dtype once so the kernel never
    re-casts resident weights each grid step; layer-1 weights stay f32 when the
    small-K VPU path is used."""
    obs_dim, hidden = w1.shape
    action_dim = w2.shape[1]
    w1p = w1.astype(jnp.float32 if obs_dim <= _VPU_L1_MAX_K else mxu_dtype)
    w2p = w2.astype(mxu_dtype)
    b1p = jnp.reshape(b1, (1, hidden)).astype(jnp.float32)
    b2p = jnp.reshape(b2, (1, action_dim)).astype(jnp.float32)
    return w1p, b1p, w2p, b2p


@functools.partial(jax.jit, static_argnames=("block_b",))
def qnetwork_forward(x, w1, b1, w2, b2, *, block_b=2048):
    """x: [B, obs_dim]; w1: [obs_dim, H]; b1: [1, H] (or [H]); w2: [H, A]; b2: [1, A] (or [A])."""
    B, obs_dim = x.shape
    H = w1.shape[1]
    A = w2.shape[1]
    b1 = jnp.reshape(b1, (1, H))
    b2 = jnp.reshape(b2, (1, A))

    block_b = min(int(block_b), _MAX_BLOCK_B)

    # Batch tiling:
    #  * big tiles (default 2048 rows) amortize the ~0.35us per-grid-step cost,
    #  * near-equal tile sizes keep padding waste <= n_steps * 7 rows,
    #  * >= 2 steps once B >= 256 so the "parallel" axis uses both v7x TCs.
    n_steps = max(_cdiv(B, block_b), 2 if B >= 256 else 1)
    TB = _round_up(_cdiv(B, n_steps), _SUBLANE)
    B_pad = n_steps * TB
    x_p = x if B_pad == B else jnp.zeros((B_pad, obs_dim), x.dtype).at[:B].set(x)

    cost = pl.CostEstimate(
        flops=2 * B_pad * obs_dim * H + 2 * B_pad * H * A,
        transcendentals=0,
        bytes_accessed=(x_p.size * x_p.dtype.itemsize
                        + w1.size * w1.dtype.itemsize + b1.size * b1.dtype.itemsize
                        + w2.size * w2.dtype.itemsize + b2.size * b2.dtype.itemsize
                        + B_pad * A * 4),
    )

    out = pl.pallas_call(
        _qnetwork_kernel,
        out_shape=jax.ShapeDtypeStruct((B_pad, A), jnp.float32),
        grid=(n_steps,),
        in_specs=[
            pl.BlockSpec((TB, obs_dim), lambda i: (i, 0)),   # x: streamed per tile
            pl.BlockSpec((obs_dim, H), lambda i: (0, 0)),    # w1: VMEM-resident
            pl.BlockSpec((1, H), lambda i: (0, 0)),          # b1: VMEM-resident
            pl.BlockSpec((H, A), lambda i: (0, 0)),          # w2: VMEM-resident
            pl.BlockSpec((1, A), lambda i: (0, 0)),          # b2: VMEM-resident
        ],
        # Narrow output: only the A useful columns ever hit HBM (no padded slab,
        # no trailing [:, :A] slice re-reading a 64x-too-big array).
        out_specs=pl.BlockSpec((TB, A), lambda i: (i, 0)),
        compiler_params=pltpu.CompilerParams(
            dimension_semantics=("parallel",),  # shard batch tiles across TCs
        ),
        cost_estimate=cost,
    )(x_p, w1, b1, w2, b2)

    return out if B_pad == B else out[:B]


def init_qnetwork_params(key, obs_dim, action_dim, hidden=128):
    """Deterministic init mimicking PyTorch nn.Linear default (uniform +-1/sqrt(fan_in))."""
    k1, k2, k3, k4 = jax.random.split(key, 4)
    bound1 = 1.0 / jnp.sqrt(obs_dim)
    bound2 = 1.0 / jnp.sqrt(hidden)
    w1 = jax.random.uniform(k1, (obs_dim, hidden), jnp.float32, -bound1, bound1)
    b1 = jax.random.uniform(k2, (1, hidden), jnp.float32, -bound1, bound1)
    w2 = jax.random.uniform(k3, (hidden, action_dim), jnp.float32, -bound2, bound2)
    b2 = jax.random.uniform(k4, (1, action_dim), jnp.float32, -bound2, bound2)
    return w1, b1, w2, b2


def _reference(x, w1, b1, w2, b2):
    hp = jax.lax.Precision.HIGHEST
    h = jnp.maximum(jnp.dot(x, w1, precision=hp) + b1, 0.0)
    return jnp.dot(h, w2, precision=hp) + b2


if __name__ == "__main__":
    key = jax.random.PRNGKey(0)
    k_params, k_x, k_x2, k_x3, k_p2, k_x4 = jax.random.split(key, 6)

    batch, obs_dim, action_dim, hidden = 8, 4, 2, 128  # CartPole-ish sizes
    w1, b1, w2, b2 = init_qnetwork_params(k_params, obs_dim, action_dim, hidden)
    x = jax.random.normal(k_x, (batch, obs_dim), jnp.float32)
    ref = _reference(x, w1, b1, w2, b2)

    # f32 path (near-exact match to the reference).
    p32 = prepare_qnetwork_params(w1, b1, w2, b2, mxu_dtype=jnp.float32)
    out = jax.block_until_ready(qnetwork_forward(x, *p32))
    assert out.shape == (batch, action_dim)
    assert jnp.allclose(out, ref, atol=1e-4, rtol=1e-4)

    # bf16-MXU path (recommended default on v5e/v6e/v7x; f32 accum + f32 VPU math).
    pbf = prepare_qnetwork_params(w1, b1, w2, b2)  # mxu_dtype=bfloat16
    out_bf16 = jax.block_until_ready(qnetwork_forward(x, *pbf))
    assert jnp.allclose(out_bf16, ref, atol=3e-2, rtol=3e-2)

    # Medium batch: 2-step parallel grid (both v7x TCs), zero padding (TB=520).
    xb = jax.random.normal(k_x2, (1040, obs_dim), jnp.float32)
    out_big = jax.block_until_ready(qnetwork_forward(xb, *p32))
    ref_big = _reference(xb, w1, b1, w2, b2)
    assert out_big.shape == (1040, action_dim)
    assert jnp.allclose(out_big, ref_big, atol=1e-4, rtol=1e-4)

    # Non-multiple batch: exercises batch padding + row slice.
    xc = jax.random.normal(k_x3, (2600, obs_dim), jnp.float32)
    out_c = jax.block_until_ready(qnetwork_forward(xc, *pbf))
    ref_c = _reference(xc, w1, b1, w2, b2)
    assert out_c.shape == (2600, action_dim)
    assert jnp.allclose(out_c, ref_c, atol=3e-2, rtol=3e-2)

    # Larger obs_dim: exercises the MXU layer-1 branch.
    w1l, b1l, w2l, b2l = init_qnetwork_params(k_p2, 32, 4, hidden)
    pl32 = prepare_qnetwork_params(w1l, b1l, w2l, b2l)
    xl = jax.random.normal(k_x4, (16, 32), jnp.float32)
    out_l = jax.block_until_ready(qnetwork_forward(xl, *pl32))
    ref_l = _reference(xl, w1l, b1l, w2l, b2l)
    assert out_l.shape == (16, 4)
    assert jnp.allclose(out_l, ref_l, atol=3e-2, rtol=3e-2)

    print("KERNEL_OK")
</pallas_src>

<mosaic_0001>
module attributes {stable_mosaic.version = 11 : i64} {
  func.func @_qnetwork_kernel(%arg0: i32, %arg1: memref<8x4xf32, #tpu.memory_space<vmem>>, %arg2: memref<4x128xf32, #tpu.memory_space<vmem>>, %arg3: memref<1x128xf32, #tpu.memory_space<vmem>>, %arg4: memref<128x2xf32, #tpu.memory_space<vmem>>, %arg5: memref<1x2xf32, #tpu.memory_space<vmem>>, %arg6: memref<8x2xf32, #tpu.memory_space<vmem>>) attributes {dimension_semantics = [#tpu.dimension_semantics<parallel>], iteration_bounds = array<i64: 1>, scalar_prefetch = 0 : i64, scratch_operands = 0 : i64, tpu.core_type = #tpu.core_type<tc>, window_params = [{transform_indices = @transform_0, window_bounds = array<i64: 8, 4>}, {pipeline_mode = #tpu.pipeline_mode<synchronous>, transform_indices = @transform_1, window_bounds = array<i64: 4, 128>}, {pipeline_mode = #tpu.pipeline_mode<synchronous>, transform_indices = @transform_2, window_bounds = array<i64: 1, 128>}, {pipeline_mode = #tpu.pipeline_mode<synchronous>, transform_indices = @transform_3, window_bounds = array<i64: 128, 2>}, {pipeline_mode = #tpu.pipeline_mode<synchronous>, transform_indices = @transform_4, window_bounds = array<i64: 1, 2>}, {transform_indices = @transform_5, window_bounds = array<i64: 8, 2>}]} {
    %c0 = arith.constant 0 : index
    %c0_0 = arith.constant 0 : index
    %0 = vector.load %arg1[%c0, %c0_0] : memref<8x4xf32, #tpu.memory_space<vmem>>, vector<8x4xf32>
    %c0_1 = arith.constant 0 : index
    %c0_2 = arith.constant 0 : index
    %1 = vector.load %arg2[%c0_1, %c0_2] : memref<4x128xf32, #tpu.memory_space<vmem>>, vector<4x128xf32>
    %2 = vector.extract_strided_slice %0 {offsets = [0, 0], sizes = [8, 1], strides = [1, 1]} : vector<8x4xf32> to vector<8x1xf32>
    %3 = vector.extract_strided_slice %1 {offsets = [0, 0], sizes = [1, 128], strides = [1, 1]} : vector<4x128xf32> to vector<1x128xf32>
    %4 = vector.broadcast %2 : vector<8x1xf32> to vector<8x128xf32>
    %5 = vector.broadcast %3 : vector<1x128xf32> to vector<8x128xf32>
    %6 = arith.mulf %4, %5 : vector<8x128xf32>
    %7 = vector.extract_strided_slice %0 {offsets = [0, 1], sizes = [8, 1], strides = [1, 1]} : vector<8x4xf32> to vector<8x1xf32>
    %8 = vector.extract_strided_slice %1 {offsets = [1, 0], sizes = [1, 128], strides = [1, 1]} : vector<4x128xf32> to vector<1x128xf32>
    %9 = vector.broadcast %7 : vector<8x1xf32> to vector<8x128xf32>
    %10 = vector.broadcast %8 : vector<1x128xf32> to vector<8x128xf32>
    %11 = arith.mulf %9, %10 : vector<8x128xf32>
    %12 = arith.addf %6, %11 : vector<8x128xf32>
    %13 = vector.extract_strided_slice %0 {offsets = [0, 2], sizes = [8, 1], strides = [1, 1]} : vector<8x4xf32> to vector<8x1xf32>
    %14 = vector.extract_strided_slice %1 {offsets = [2, 0], sizes = [1, 128], strides = [1, 1]} : vector<4x128xf32> to vector<1x128xf32>
    %15 = vector.broadcast %13 : vector<8x1xf32> to vector<8x128xf32>
    %16 = vector.broadcast %14 : vector<1x128xf32> to vector<8x128xf32>
    %17 = arith.mulf %15, %16 : vector<8x128xf32>
    %18 = arith.addf %12, %17 : vector<8x128xf32>
    %19 = vector.extract_strided_slice %0 {offsets = [0, 3], sizes = [8, 1], strides = [1, 1]} : vector<8x4xf32> to vector<8x1xf32>
    %20 = vector.extract_strided_slice %1 {offsets = [3, 0], sizes = [1, 128], strides = [1, 1]} : vector<4x128xf32> to vector<1x128xf32>
    %21 = vector.broadcast %19 : vector<8x1xf32> to vector<8x128xf32>
    %22 = vector.broadcast %20 : vector<1x128xf32> to vector<8x128xf32>
    %23 = arith.mulf %21, %22 : vector<8x128xf32>
    %24 = arith.addf %18, %23 : vector<8x128xf32>
    %c0_3 = arith.constant 0 : index
    %c0_4 = arith.constant 0 : index
    %25 = vector.load %arg3[%c0_3, %c0_4] : memref<1x128xf32, #tpu.memory_space<vmem>>, vector<1x128xf32>
    %26 = vector.broadcast %25 : vector<1x128xf32> to vector<8x128xf32>
    %27 = arith.addf %24, %26 : vector<8x128xf32>
    %cst = arith.constant 0.000000e+00 : f32
    %28 = vector.broadcast %cst : f32 to vector<8x128xf32>
    %29 = arith.maximumf %27, %28 : vector<8x128xf32>
    %c0_5 = arith.constant 0 : index
    %c0_6 = arith.constant 0 : index
    %30 = vector.load %arg4[%c0_5, %c0_6] : memref<128x2xf32, #tpu.memory_space<vmem>>, vector<128x2xf32>
    %cst_7 = arith.constant dense<0.000000e+00> : vector<8x2xf32>
    %31 = tpu.matmul %29, %30, %cst_7 {dimension_numbers = #tpu.dot_dimension_numbers<[1], [0], [0], [1], [0, 0, 1, 1], [], []>} : vector<8x128xf32>, vector<128x2xf32>, vector<8x2xf32> -> vector<8x2xf32>
    %c0_8 = arith.constant 0 : index
    %c0_9 = arith.constant 0 : index
    %32 = vector.load %arg5[%c0_8, %c0_9] : memref<1x2xf32, #tpu.memory_space<vmem>>, vector<1x2xf32>
    %33 = vector.broadcast %32 : vector<1x2xf32> to vector<8x2xf32>
    %34 = arith.addf %31, %33 : vector<8x2xf32>
    %c0_10 = arith.constant 0 : index
    %c0_11 = arith.constant 0 : index
    %35 = vector.load %arg6[%c0_10, %c0_11] : memref<8x2xf32, #tpu.memory_space<vmem>>, vector<8x2xf32>
    tpu.vector_store %arg6[%c0_10, %c0_11], %34 {strides = array<i32>} : memref<8x2xf32, #tpu.memory_space<vmem>>, vector<8x2xf32>,
    return
  }
  func.func @transform_0(%arg0: i32) -> (i32, i32) {
    %c0_i32 = arith.constant 0 : i32
    %c0_i32_0 = arith.constant 0 : i32
    return %arg0, %c0_i32 : i32, i32
  }
  func.func @transform_1(%arg0: i32) -> (i32, i32) {
    %c0_i32 = arith.constant 0 : i32
    %c0_i32_0 = arith.constant 0 : i32
    %c0_i32_1 = arith.constant 0 : i32
    return %c0_i32, %c0_i32_0 : i32, i32
  }
  func.func @transform_2(%arg0: i32) -> (i32, i32) {
    %c0_i32 = arith.constant 0 : i32
    %c0_i32_0 = arith.constant 0 : i32
    %c0_i32_1 = arith.constant 0 : i32
    return %c0_i32, %c0_i32_0 : i32, i32
  }
  func.func @transform_3(%arg0: i32) -> (i32, i32) {
    %c0_i32 = arith.constant 0 : i32
    %c0_i32_0 = arith.constant 0 : i32
    %c0_i32_1 = arith.constant 0 : i32
    return %c0_i32, %c0_i32_0 : i32, i32
  }
  func.func @transform_4(%arg0: i32) -> (i32, i32) {
    %c0_i32 = arith.constant 0 : i32
    %c0_i32_0 = arith.constant 0 : i32
    %c0_i32_1 = arith.constant 0 : i32
    return %c0_i32, %c0_i32_0 : i32, i32
  }
  func.func @transform_5(%arg0: i32) -> (i32, i32) {
    %c0_i32 = arith.constant 0 : i32
    %c0_i32_0 = arith.constant 0 : i32
    return %arg0, %c0_i32 : i32, i32
  }
}

</mosaic_0001>

<bundles_post_ra>
// kernel: qnetwork_forward.1
= control target key start
LH: loop header
LB: loop body
LE: loop exit
PB: predicated region body
PF: predicated region fallthrough
CT: control target
= control target key end

     0   :  { %v260_v0 = vmov 0   ;;  %v261_v2 = vmov 2   ;;  %v262_v8 = vmov 0.0|0.0   ;;  %v263_v12 = vmov 1   ;;  %s360_s0 = inlined_call_operand.vmem [shape: f32[8,4], index: 0, kind: input, shape index: {}]   ;;  %s361_s3 = inlined_call_operand.vmem [shape: f32[128,2], index: 3, kind: input, shape index: {}]   ;;  %s362_s1 = inlined_call_operand.vmem [shape: f32[4,128], index: 1, kind: input, shape index: {}]   ;;  %s363_s2 = inlined_call_operand.vmem [shape: f32[1,128], index: 2, kind: input, shape index: {}]   ;;  %s364_s4 = inlined_call_operand.vmem [shape: f32[1,2], index: 4, kind: input, shape index: {}]   ;;  %s365_s5 = inlined_call_operand.vmem [shape: f32[8,2], index: 5, kind: output, shape index: {}]  }
   0x1   :  { %255 = vset.pattern.permute.xlu0 %v260_v0  ;;  %v20_v1 = vld [vmem:[%s360_s0] sm:$0xff]  ;;  %257 = vset.pattern.permute.xlu1 %v261_v2  ;;  %v72_v4 = vld [vmem:[%s361_s3 + $0x8] sm:$0xff]  ;;  %v73_v6 = vld [vmem:[%s361_s3 + $0x10] sm:$0xff]  ;;  %v264_v13 = vmov 3   ;;  %vm265_vm0 = vmmov 0   ;;  %v266_v20 = vmov 0.0   ;;  %v27_v31 = vlaneseq }
   0x2   :  { %v71_v3 = vld [vmem:[%s361_s3] sm:$0xff]  ;;  %24 = vperm.xlu0 %255, %v20_v1   ;;  %43 = vperm.xlu1 %257, %v20_v1   ;;  %v74_v7 = vld [vmem:[%s361_s3 + $0x18] sm:$0xff]  ;;  %v76_v11 = vld [vmem:[%s361_s3 + $0x28] sm:$0xff]  ;;  %vm164_vm1 = vcmask 15360  }
   0x3   :  { %v225_v5 = vpack.c.bf16 %v72_v4, %v71_v3  ;;  %224 = vmatprep.subr.bf16.mxu0 %v262_v8  ;;  %v228_v9 = vpack.c.bf16 %v74_v7, %v73_v6  ;;  %v75_v10 = vld [vmem:[%s361_s3 + $0x20] sm:$0xff]  ;;  %v77_v15 = vld [vmem:[%s361_s3 + $0x30] sm:$0xff]  ;;  %v78_v16 = vld [vmem:[%s361_s3 + $0x38] sm:$0xff]  ;;  %221 = vmatprep.mubr.msk.f32.mxu0 %vm265_vm0, %v266_v20  ;;  %v28_v32 = vshrl.u32 %v27_v31, 7 }
   0x4   :  { %v231_v14 = vpack.c.bf16 %v76_v11, %v75_v10  ;;  %v234_v17 = vpack.c.bf16 %v78_v16, %v77_v15  ;;  %v79_v18 = vld [vmem:[%s361_s3 + $0x40] sm:$0xff]  ;;  %v80_v19 = vld [vmem:[%s361_s3 + $0x48] sm:$0xff]  ;;  %v81_v22 = vld [vmem:[%s361_s3 + $0x50] sm:$0xff] }
   0x5   :  { %226 = vmatpush3.bf16.msra.mxu0 %v225_v5  ;;  %v237_v21 = vpack.c.bf16 %v80_v19, %v79_v18  ;;  %v82_v23 = vld [vmem:[%s361_s3 + $0x58] sm:$0xff]  ;;  %v83_v25 = vld [vmem:[%s361_s3 + $0x60] sm:$0xff]  ;;  %v84_v26 = vld [vmem:[%s361_s3 + $0x68] sm:$0xff]  ;;  %v29_v33 = vsub.s32 0, %v28_v32  ;;  %v38_v34 = vsub.s32 1, %v28_v32  ;;  %v48_v37 = vsub.s32 2, %v28_v32 }
   0x6   :  { %227 = vmatprep.subr.bf16.mxu0 %v262_v8  ;;  %256 = vset.pattern.permute.xlu0 %v263_v12  ;;  %v240_v24 = vpack.c.bf16 %v82_v23, %v81_v22  ;;  %v243_v27 = vpack.c.bf16 %v84_v26, %v83_v25  ;;  %v85_v28 = vld [vmem:[%s361_s3 + $0x70] sm:$0xff]  ;;  %v86_v29 = vld [vmem:[%s361_s3 + $0x78] sm:$0xff]  ;;  %v21_v35 = vld [vmem:[%s362_s1] sm:$0xf]  ;;  %v58_v39 = vsub.s32 3, %v28_v32 }
   0x7   :  { %258 = vset.pattern.permute.xlu1 %v264_v13  ;;  %33 = vperm.xlu0 %256, %v20_v1   ;;  %v246_v30 = vpack.c.bf16 %v86_v29, %v85_v28  ;;  %v30_v40 = vrot.slane %v21_v35, %v29_v33  ;;  %v39_v41 = vrot.slane %v21_v35, %v38_v34  ;;  %v170_v52 = vld [vmem:[%s363_s2] ss:$0 sm:$0xff] }
   0x8   :  { %53 = vperm.xlu1 %258, %v20_v1   ;;  %v49_v42 = vrot.slane %v21_v35, %v48_v37  ;;  %v59_v43 = vrot.slane %v21_v35, %v58_v39  ;;  %v171_v56 = vld [vmem:[%s364_s4] ss:$0 sm:$0xff] }
   0x9   :  { %229 = vmatpush3.bf16.msra.mxu0 %v228_v9 }
   0xa   :  { %230 = vmatprep.subr.bf16.mxu0 %v262_v8 }
   0xb   :  { %259 = vset.pattern.permute.xlu0 %v264_v13 }
   0xd   :  { %232 = vmatpush3.bf16.msra.mxu0 %v231_v14 }
   0xe   :  { %233 = vmatprep.subr.bf16.mxu0 %v262_v8 }
  0x11   :  { %235 = vmatpush3.bf16.msra.mxu0 %v234_v17 }
  0x12   :  { %236 = vmatprep.subr.bf16.mxu0 %v262_v8 }
  0x15   :  { %238 = vmatpush3.bf16.msra.mxu0 %v237_v21 }
  0x16   :  { %239 = vmatprep.subr.bf16.mxu0 %v262_v8 }
  0x19   :  { %241 = vmatpush3.bf16.msra.mxu0 %v240_v24 }
  0x1a   :  { %242 = vmatprep.subr.bf16.mxu0 %v262_v8 }
  0x1d   :  { %244 = vmatpush3.bf16.msra.mxu0 %v243_v27 }
  0x1e   :  { %245 = vmatprep.subr.bf16.mxu0 %v262_v8 }
  0x21   :  { %247 = vmatpush3.bf16.msra.mxu0 %v246_v30 }
  0x81   :  { %v25_v36 = vpop.permute.xlu0 %24  ;;  %v44_v38 = vpop.permute.xlu1 %43 }
  0x82   :  { %v31_v46 = vmul.f32 %v30_v40, %v25_v36  ;;  %v50_v48 = vmul.f32 %v49_v42, %v44_v38 }
  0x86   :  { %v34_v44 = vpop.permute.xlu0 %33 }
  0x87   :  { %v54_v45 = vpop.permute.xlu1 %53  ;;  %v40_v47 = vmul.f32 %v39_v41, %v34_v44 }
  0x88   :  { %v60_v50 = vmul.f32 %v59_v43, %v54_v45 }
  0x89   :  { %v41_v49 = vadd.f32 %v40_v47, %v31_v46 }
  0x8b   :  { %v51_v51 = vadd.f32 %v50_v48, %v41_v49 }
  0x8d   :  { %v61_v53 = vadd.f32 %v60_v50, %v51_v51 }
  0x8f   :  { %v69_v54 = vadd.f32 %v170_v52, %v61_v53 }
  0x91   :  { %v70_v55 = vmax.f32 %v69_v54, 0.0 }
  0x93   :  { %222 = vmatmul.mubr.f32.vlgmr.msra.gmra.mrb[0].mxu0 %v70_v55 }
 0x166   :  { %v160_v57 = vpop.f32.mrb[0].mxu0 }
 0x167   :  { %v161_v58 = vadd.f32 %v171_v56, %v160_v57  ;;  %v223_v59 = vpop.f32.mrb[1].mxu0 }
 0x169   :  { %165 = vst.msk [vmem:[%s365_s5] sm:$0xff] %vm164_vm1, %v161_v58 }

</bundles_post_ra>
